<compile_context>
chip_gen: v6e
topology: v6e:2x2x1
jax: 0.10.0
libtpu: 0.0.40
codegen_flags: <defaults>
</compile_context>

<pallas_src>
import numpy as np
import jax
import jax.numpy as jnp
from jax import lax
from jax.experimental import pallas as pl
from jax.experimental.pallas import tpu as pltpu


_TARGET_BLOCK_BYTES = 12 << 20   # per-step input payload; 2x-buffered ~24 MiB


def _adaptive_pool_matrix(in_size: int, out_size: int) -> np.ndarray:
    """(out_size, in_size) averaging matrix matching PyTorch adaptive pooling."""
    A = np.zeros((out_size, in_size), dtype=np.float32)
    for i in range(out_size):
        start = (i * in_size) // out_size
        end = -((-(i + 1) * in_size) // out_size)  # ceil((i+1)*in/out)
        A[i, start:end] = 1.0 / (end - start)
    return A


def _avg_pool_kernel(x_ref, a_ref, o_ref):
    # x_ref: (B, HW)   a_ref: (HW, PP)   o_ref: (B, PP)
    # A_T is the small stationary MXU operand; X rows stream through.
    y = lax.dot_general(
        x_ref[...], a_ref[...],
        dimension_numbers=(((1,), (0,)), ((), ())),
        preferred_element_type=jnp.float32,
    )
    o_ref[...] = y.astype(o_ref.dtype)


def _padded_block_bytes(rows: int, cols: int, dtype) -> int:
    """VMEM footprint of a (rows, cols) block including lane/sublane padding."""
    itemsize = jnp.dtype(dtype).itemsize
    lane_cols = ((cols + 127) // 128) * 128
    pack = max(1, 4 // itemsize)              # values per 32-bit sublane word
    sub = 8 * pack
    rows_p = ((rows + sub - 1) // sub) * sub
    return rows_p * lane_cols * itemsize


def _choose_block_rows(nc: int, hw: int, dtype) -> int:
    """Rows (planes) per grid step.

    Targets ~12 MiB of lane-padded input per step (double-buffered ~24 MiB,
    safe on every generation incl. v7x's 64 MiB VMEM).  For NC >= 256 we
    guarantee >= 2 lane-dense blocks so the grid can be sharded across the
    v7x megacore and the software pipeline always has DMA/compute overlap.
    """
    itemsize = jnp.dtype(dtype).itemsize
    lane_cols = ((hw + 127) // 128) * 128     # lane padding counts toward VMEM
    row_bytes = lane_cols * itemsize
    target_rows = (_TARGET_BLOCK_BYTES // max(row_bytes, 1)) // 128 * 128
    target_rows = max(128, target_rows)
    if nc < 256:
        return nc                             # tiny problem: one full block
    half_rows = ((pl.cdiv(nc, 2) + 127) // 128) * 128
    return min(target_rows, half_rows)


def avg_pool(x: jax.Array, pool_size: int) -> jax.Array:
    """Equivalent of F.adaptive_avg_pool2d(x, pool_size).flatten(1) for NCHW x."""
    N, C, H, W = x.shape
    P = pool_size
    NC, HW, PP = N * C, H * W, P * P

    orig_dtype = x.dtype
    if x.dtype not in (jnp.bfloat16, jnp.float32):
        x = x.astype(jnp.float32)             # e.g. f16: compute in f32
    compute_dtype = x.dtype

    a_h = _adaptive_pool_matrix(H, P)
    a_w = _adaptive_pool_matrix(W, P)
    # kron gives A[i*P + j, h*W + w] = A_h[i, h] * A_w[j, w]; pre-transpose.
    a_np = np.kron(a_h, a_w).T                # (H*W, P*P)
    a = jnp.asarray(a_np, dtype=compute_dtype)

    x_flat = x.reshape(NC, HW)

    B = _choose_block_rows(NC, HW, compute_dtype)
    grid = (pl.cdiv(NC, B),)

    # Explicit VMEM budget: double-buffered input + output blocks + A.
    vmem_need = (2 * _padded_block_bytes(B, HW, compute_dtype)
                 + 2 * _padded_block_bytes(B, PP, compute_dtype)
                 + 2 * _padded_block_bytes(HW, PP, compute_dtype)
                 + (2 << 20))
    vmem_limit = max(vmem_need, 16 << 20)

    itemsize = jnp.dtype(compute_dtype).itemsize
    cost = pl.CostEstimate(
        flops=2 * NC * PP * HW,
        transcendentals=0,
        bytes_accessed=NC * HW * itemsize + NC * PP * itemsize
                       + HW * PP * itemsize,
    )

    out = pl.pallas_call(
        _avg_pool_kernel,
        out_shape=jax.ShapeDtypeStruct((NC, PP), compute_dtype),
        grid_spec=pltpu.PrefetchScalarGridSpec(
            num_scalar_prefetch=0,
            grid=grid,
            in_specs=[
                pl.BlockSpec((B, HW), lambda i: (i, 0)),    # B planes per step
                pl.BlockSpec((HW, PP), lambda i: (0, 0)),   # pooling matrix
            ],
            out_specs=pl.BlockSpec((B, PP), lambda i: (i, 0)),
        ),
        compiler_params=pltpu.CompilerParams(
            dimension_semantics=("parallel",),
            vmem_limit_bytes=vmem_limit,
        ),
        cost_estimate=cost,
    )(x_flat, a)

    # (N*C, P*P) -> (N, C*P*P); matches flatten(1) of (N, C, P, P).
    out = out.reshape(N, C * PP)
    if out.dtype != orig_dtype:
        out = out.astype(orig_dtype)
    return out


def _reference(x: np.ndarray, pool_size: int) -> np.ndarray:
    """Pure-numpy reference implementing PyTorch adaptive_avg_pool2d semantics."""
    N, C, H, W = x.shape
    P = pool_size
    out = np.zeros((N, C, P, P), dtype=np.float32)
    for i in range(P):
        hs = (i * H) // P
        he = -((-(i + 1) * H) // P)
        for j in range(P):
            ws = (j * W) // P
            we = -((-(j + 1) * W) // P)
            out[:, :, i, j] = x[:, :, hs:he, ws:we].mean(axis=(2, 3))
    return out.reshape(N, C * P * P)


if __name__ == "__main__":
    key = jax.random.PRNGKey(0)

    # Primary test: divisible spatial dims (shape implied by the module spec).
    N, C, H, W = 2, 4, 16, 16
    pool_size = 4
    x = jax.random.normal(key, (N, C, H, W), dtype=jnp.float32)

    y = jax.block_until_ready(avg_pool(x, pool_size))
    y_ref = _reference(np.asarray(x), pool_size)
    assert y.shape == (N, C * pool_size * pool_size), y.shape
    np.testing.assert_allclose(np.asarray(y), y_ref, rtol=1e-5, atol=1e-5)

    # Non-divisible H/W exercise the adaptive bin boundaries.
    x2 = jax.random.normal(jax.random.PRNGKey(1), (2, 3, 15, 13), dtype=jnp.float32)
    y2 = jax.block_until_ready(avg_pool(x2, 4))
    np.testing.assert_allclose(np.asarray(y2), _reference(np.asarray(x2), 4),
                               rtol=1e-5, atol=1e-5)

    # Larger N*C exercises the multi-block grid + partial last block path.
    x3 = jax.random.normal(jax.random.PRNGKey(2), (4, 96, 14, 14), dtype=jnp.float32)
    y3 = jax.block_until_ready(avg_pool(x3, 4))
    np.testing.assert_allclose(np.asarray(y3), _reference(np.asarray(x3), 4),
                               rtol=1e-5, atol=1e-5)

    print("KERNEL_OK")
</pallas_src>

<mosaic_0001>
module attributes {stable_mosaic.version = 11 : i64} {
  func.func @_avg_pool_kernel(%arg0: i32, %arg1: memref<8x256xf32, #tpu.memory_space<vmem>>, %arg2: memref<256x16xf32, #tpu.memory_space<vmem>>, %arg3: memref<8x16xf32, #tpu.memory_space<vmem>>) attributes {dimension_semantics = [#tpu.dimension_semantics<parallel>], iteration_bounds = array<i64: 1>, scalar_prefetch = 0 : i64, scratch_operands = 0 : i64, tpu.core_type = #tpu.core_type<tc>, window_params = [{transform_indices = @transform_0, window_bounds = array<i64: 8, 256>}, {pipeline_mode = #tpu.pipeline_mode<synchronous>, transform_indices = @transform_1, window_bounds = array<i64: 256, 16>}, {transform_indices = @transform_2, window_bounds = array<i64: 8, 16>}]} {
    %c0 = arith.constant 0 : index
    %c0_0 = arith.constant 0 : index
    %0 = vector.load %arg1[%c0, %c0_0] : memref<8x256xf32, #tpu.memory_space<vmem>>, vector<8x256xf32>
    %c0_1 = arith.constant 0 : index
    %c0_2 = arith.constant 0 : index
    %1 = vector.load %arg2[%c0_1, %c0_2] : memref<256x16xf32, #tpu.memory_space<vmem>>, vector<256x16xf32>
    %cst = arith.constant dense<0.000000e+00> : vector<8x16xf32>
    %2 = tpu.matmul %0, %1, %cst {dimension_numbers = #tpu.dot_dimension_numbers<[1], [0], [0], [1], [0, 0, 1, 1], [], []>} : vector<8x256xf32>, vector<256x16xf32>, vector<8x16xf32> -> vector<8x16xf32>
    %c0_3 = arith.constant 0 : index
    %c0_4 = arith.constant 0 : index
    %3 = vector.load %arg3[%c0_3, %c0_4] : memref<8x16xf32, #tpu.memory_space<vmem>>, vector<8x16xf32>
    tpu.vector_store %arg3[%c0_3, %c0_4], %2 {strides = array<i32>} : memref<8x16xf32, #tpu.memory_space<vmem>>, vector<8x16xf32>,
    return
  }
  func.func @transform_0(%arg0: i32) -> (i32, i32) {
    %c0_i32 = arith.constant 0 : i32
    %c0_i32_0 = arith.constant 0 : i32
    return %arg0, %c0_i32 : i32, i32
  }
  func.func @transform_1(%arg0: i32) -> (i32, i32) {
    %c0_i32 = arith.constant 0 : i32
    %c0_i32_0 = arith.constant 0 : i32
    %c0_i32_1 = arith.constant 0 : i32
    return %c0_i32, %c0_i32_0 : i32, i32
  }
  func.func @transform_2(%arg0: i32) -> (i32, i32) {
    %c0_i32 = arith.constant 0 : i32
    %c0_i32_0 = arith.constant 0 : i32
    return %arg0, %c0_i32 : i32, i32
  }
}

</mosaic_0001>

<bundles_post_ra>
// kernel: tpu_custom_call.1
= control target key start
LH: loop header
LB: loop body
LE: loop exit
PB: predicated region body
PF: predicated region fallthrough
CT: control target
= control target key end

     0   :  { %s311_s0 = inlined_call_operand.vmem [shape: f32[8,256], index: 0, kind: input, shape index: {}]   ;;  %s312_s1 = inlined_call_operand.vmem [shape: f32[256,16], index: 1, kind: input, shape index: {}]   ;;  %s313_s2 = inlined_call_operand.hbm [shape: f32[8,16], index: 2, kind: output, shape index: {}]  }
   0x1   :  { %v45_v0 = vld [vmem:[%s312_s1 + $0xf8] sm:$0xff]  ;;  %v44_v2 = vld [vmem:[%s312_s1 + $0xf0] sm:$0xff]  ;;  %v43_v4 = vld [vmem:[%s312_s1 + $0xe8] sm:$0xff] }
   0x2   :  { %v29_v1 = vld [vmem:[%s312_s1 + $0x78] sm:$0xff]  ;;  %132 = vmatprep.subr.mxu0 %v45_v0  ;;  %v28_v3 = vld [vmem:[%s312_s1 + $0x70] sm:$0xff]  ;;  %v27_v5 = vld [vmem:[%s312_s1 + $0x68] sm:$0xff] }
   0x3   :  { %133 = vmatpush3.msra.mxu0 %v29_v1  ;;  %v42_v6 = vld [vmem:[%s312_s1 + $0xe0] sm:$0xff]  ;;  %v41_v8 = vld [vmem:[%s312_s1 + $0xd8] sm:$0xff]  ;;  %v40_v10 = vld [vmem:[%s312_s1 + $0xd0] sm:$0xff] }
   0x4   :  { %134 = vmatprep.subr.mxu0 %v44_v2  ;;  %v26_v7 = vld [vmem:[%s312_s1 + $0x60] sm:$0xff]  ;;  %v25_v9 = vld [vmem:[%s312_s1 + $0x58] sm:$0xff]  ;;  %v24_v11 = vld [vmem:[%s312_s1 + $0x50] sm:$0xff] }
   0x5   :  { %135 = vmatpush3.msra.mxu0 %v28_v3  ;;  %v39_v12 = vld [vmem:[%s312_s1 + $0xc8] sm:$0xff] }
   0x6   :  { %136 = vmatprep.subr.mxu0 %v43_v4  ;;  %v13_v13 = vld [vmem:[%s311_s0 + $0x8] sm:$0xff] }
   0x7   :  { %137 = vmatpush3.msra.mxu0 %v27_v5  ;;  %v23_v14 = vld [vmem:[%s312_s1 + $0x48] sm:$0xff]  ;;  %110 = vmatprep.mubr.f32.mxu0 %v13_v13 }
   0x8   :  { %138 = vmatprep.subr.mxu0 %v42_v6 }
   0x9   :  { %139 = vmatpush3.msra.mxu0 %v26_v7 }
   0xa   :  { %140 = vmatprep.subr.mxu0 %v41_v8 }
   0xb   :  { %141 = vmatpush3.msra.mxu0 %v25_v9 }
   0xc   :  { %142 = vmatprep.subr.mxu0 %v40_v10 }
   0xd   :  { %7 = vsyncpa [#allocation3], 0  ;;  %143 = vmatpush3.msra.mxu0 %v24_v11  ;;  %v38_v15 = vld [vmem:[%s312_s1 + $0xc0] sm:$0xff]  ;;  %v37_v17 = vld [vmem:[%s312_s1 + $0xb8] sm:$0xff]  ;;  %s190_s21 = smov [#allocation2]   ;;  %vm116_vm0 = vcmask 130048  }
   0xe   :  { %144 = vmatprep.subr.mxu0 %v39_v12  ;;  %v22_v16 = vld [vmem:[%s312_s1 + $0x40] sm:$0xff]  ;;  %v21_v18 = vld [vmem:[%s312_s1 + $0x38] sm:$0xff]  ;;  %v36_v19 = vld [vmem:[%s312_s1 + $0xb0] sm:$0xff]  ;;  %s124_s22 = sshll.u32 %s190_s21, 4  ;;  %s125_s22 = int_to_ptr.vmem [resolvable:$true] %s124_s22 }
   0xf   :  { %145 = vmatpush3.msra.mxu0 %v23_v14  ;;  %v20_v20 = vld [vmem:[%s312_s1 + $0x30] sm:$0xff]  ;;  %v35_v21 = vld [vmem:[%s312_s1 + $0xa8] sm:$0xff]  ;;  %v34_v23 = vld [vmem:[%s312_s1 + $0xa0] sm:$0xff]  ;;  %s168_s23 = scalar_lea.vmem %s125_s22, 128  ;;  %p173_p1 = scmp.lt.s32.totalorder %s125_s22, %s125_s22 }
  0x10   :  { %146 = vmatprep.subr.mxu0 %v38_v15  ;;  %v19_v22 = vld [vmem:[%s312_s1 + $0x28] sm:$0xff]  ;;  %v18_v24 = vld [vmem:[%s312_s1 + $0x20] sm:$0xff]  ;;  %v33_v25 = vld [vmem:[%s312_s1 + $0x98] sm:$0xff]  ;;  %p169_p0 = scmp.ne.s32.totalorder %s125_s22, %s168_s23  ;;  %p174_p2 = scmp.lt.s32.totalorder %s168_s23, %s168_s23 }
  0x11   :  { %147 = vmatpush3.msra.mxu0 %v22_v16  ;;  %v17_v26 = vld [vmem:[%s312_s1 + $0x18] sm:$0xff]  ;;  %v32_v27 = vld [vmem:[%s312_s1 + $0x90] sm:$0xff]  ;;  %v31_v29 = vld [vmem:[%s312_s1 + $0x88] sm:$0xff] }
  0x12   :  { %148 = vmatprep.subr.mxu0 %v37_v17  ;;  %v16_v28 = vld [vmem:[%s312_s1 + $0x10] sm:$0xff]  ;;  %v15_v30 = vld [vmem:[%s312_s1 + $0x8] sm:$0xff]  ;;  %v30_v31 = vld [vmem:[%s312_s1 + $0x80] sm:$0xff]  ;;  %p175_p3 = por %p174_p2, %p173_p1 }
  0x13   :  { %149 = vmatpush3.msra.mxu0 %v21_v18  ;;  %v14_v32 = vld [vmem:[%s312_s1] sm:$0xff] }
  0x14   :  { %150 = vmatprep.subr.mxu0 %v36_v19  ;;  %v12_v33 = vld [vmem:[%s311_s0] sm:$0xff]  ;;  %p176_p4 = pnand %p175_p3, %p169_p0 }
  0x15   :  { %151 = vmatpush3.msra.mxu0 %v20_v20 }
  0x16   :  { %152 = vmatprep.subr.mxu0 %v35_v21 }
  0x17   :  { %153 = vmatpush3.msra.mxu0 %v19_v22 }
  0x18   :  { %154 = vmatprep.subr.mxu0 %v34_v23 }
  0x19   :  { %155 = vmatpush3.msra.mxu0 %v18_v24 }
  0x1a   :  { %156 = vmatprep.subr.mxu0 %v33_v25 }
  0x1b   :  { %157 = vmatpush3.msra.mxu0 %v17_v26 }
  0x1c   :  { %158 = vmatprep.subr.mxu0 %v32_v27 }
  0x1d   :  { %159 = vmatpush3.msra.mxu0 %v16_v28 }
  0x1e   :  { %160 = vmatprep.subr.mxu0 %v31_v29 }
  0x1f   :  { %161 = vmatpush3.msra.mxu0 %v15_v30 }
  0x20   :  { %162 = vmatprep.subr.mxu0 %v30_v31 }
  0x21   :  { %163 = vmatpush3.msra.mxu0 %v14_v32 }
  0x22   :  { %111 = vmatmul.mubr.f32.vlgmr.msra.gmra.mxu0 %v12_v33 }
  0xe2   :  { %v164_v34 = vpop.f32.mrf.mxu0 }
  0xe4   :  { %v165_v35 = vpop.f32.mrf.mxu0 }
  0xe5   :  { %v166_v36 = vadd.f32 %v165_v35, %v164_v34 }
  0xe7   :  { %117 = vst.msk [vmem:[#allocation2] sm:$0xff] %vm116_vm0, %v166_v36 }
  0xe8   :  { %179 = shalt.err (!%p176_p4)
}
  0xe9   :  { %127 = dma.vmem_to_hbm [thread:$0]  %s125_s22, 128, %s313_s2, [#allocation3]  }
  0xea   :  { %188 = dma.done.wait [#allocation3], 128  }
  0xeb   :  { %189 = vsyncadd [#allocation3], 4294967168 }
  0xec   :  { %131 = vsyncpa [#allocation3], 1 }

</bundles_post_ra>
